<compile_context>
chip_gen: v5e
topology: v5e:2x2
jax: 0.10.0
libtpu: 0.0.40
codegen_flags: <defaults>
</compile_context>

<pallas_src>
import jax
import jax.numpy as jnp
from jax.experimental import pallas as pl
from jax.experimental.pallas import tpu as pltpu


def _round_up(v, m):
    return ((v + m - 1) // m) * m


def _vmem_capacity_bytes():
    try:
        return int(pltpu.get_tpu_info().vmem_capacity_bytes)
    except Exception:
        return 128 << 20  # safe fallback (v5e/v6e size)


def _choose_tiles(B, S, D, out_itemsize=4):
    """Pick (tb, S_pad, D_pad, tn, vmem_limit).

    tb    : batch elements per grid step (multiple of 8)
    S_pad : sequence padded to a sublane multiple (8)
    D_pad : feature dim padded to a lane multiple (128); also the hidden dim
    tn    : hidden-dim tile of w1 columns (== D_pad unless D is large)
    """
    S_pad = _round_up(S, 8)
    D_pad = _round_up(max(D, 1), 128)
    if D_pad > 1536:                      # tile the hidden dim for large D
        tn = 512
        D_pad = _round_up(D_pad, tn)
    else:
        tn = D_pad

    # Generation-aware scoped-VMEM limit: 48 MiB on 128 MiB parts (v5e/v6e),
    # ~38 MiB on 64 MiB v7x.
    vmem_cap = _vmem_capacity_bytes()
    vmem_limit = int(min(48 << 20, (vmem_cap * 3) // 5))
    budget = (vmem_limit * 17) // 20      # headroom for compiler scratch

    b_up = _round_up(B, 8)

    # Target ~2048 token rows (~2-4 MB of bf16 x) per grid step.
    tb = _round_up(-(-2048 // S_pad), 8)
    # Keep >= 2 batch blocks when the batch allows it (v7x: 2 TensorCores).
    if b_up >= 16:
        tb = min(tb, max(8, ((b_up // 2) // 8) * 8))
    tb = min(tb, b_up)

    def vmem_est(tb_):
        rows = tb_ * S_pad
        x_buf = 2 * rows * D_pad * 2          # bf16 x tile, double-buffered
        x_f32 = rows * D_pad * 4              # f32 operand of the weighted sum
        h_f32 = rows * tn * 4                 # f32 tanh output tile
        w1_buf = 2 * D_pad * tn * 2           # bf16 w1 tile (<= 2 buffers)
        o_buf = 2 * tb_ * D_pad * out_itemsize
        s_acc = tb_ * S_pad * 4               # score accumulator scratch
        return x_buf + x_f32 + h_f32 + w1_buf + o_buf + s_acc + (1 << 20)

    while tb > 8 and vmem_est(tb) > budget:
        tb -= 8
    return tb, S_pad, D_pad, tn, vmem_limit


def _make_kernel(s_valid, s_pad):
    neg_big = jnp.float32(-1e30)

    def kernel(x_ref, w1_ref, b1_ref, w2_ref, o_ref, s_acc):
        # x_ref : (TB, S_pad, D_pad) bf16  -- TB batch elements per grid step
        # w1_ref: (D_pad, TN)        bf16  -- column tile of pre-transposed W1
        # b1_ref: (1, TN)            f32   -- first Linear bias tile
        # w2_ref: (1, TN)            f32   -- second Linear weight row tile
        #                                     (its bias b2 is dropped: softmax
        #                                      is shift-invariant)
        # o_ref : (TB, D_pad)              -- pooled outputs
        # s_acc : (TB, S_pad) f32 scratch  -- score accumulator over TN tiles
        n = pl.program_id(1)

        @pl.when(n == 0)
        def _():
            s_acc[...] = jnp.zeros_like(s_acc)

        TB, S, D = x_ref.shape
        x = x_ref[...]                                     # (TB, S, D) bf16

        # First Linear tile on the MXU (f32 accumulate) + tanh; the width-1
        # second Linear is a VPU multiply + lane reduce, accumulated over
        # hidden-dim tiles into s_acc.
        h = jnp.tanh(
            jnp.dot(x.reshape(TB * S, D), w1_ref[...],
                    preferred_element_type=jnp.float32) + b1_ref[...]
        )                                                  # (TB*S, TN) f32
        s_acc[...] += jnp.sum(h.reshape(TB, S, -1) * w2_ref[...], axis=-1)

        @pl.when(n == pl.num_programs(1) - 1)
        def _():
            s = s_acc[...]                                 # (TB, S) f32
            if s_pad != s_valid:   # static: mask padded sequence positions
                col = jax.lax.broadcasted_iota(jnp.int32, s.shape, 1)
                s = jnp.where(col < s_valid, s, neg_big)

            # TODO(synk): Dropout(0.5) on the scores is identity in eval mode;
            # training-mode dropout (prng_random_bits masking) not implemented.

            # Softmax over the sequence axis (lane-dense reduces, EUP recip).
            m = jnp.max(s, axis=-1, keepdims=True)
            e = jnp.exp(s - m)
            p = e * pl.reciprocal(jnp.sum(e, axis=-1, keepdims=True),
                                  approx=True)

            # Weighted sum over the sequence: out[b,d] = sum_s x[b,s,d]*p[b,s].
            xf = x_ref[...].astype(jnp.float32)
            o_ref[...] = jnp.sum(xf * p[:, :, None], axis=1).astype(o_ref.dtype)

    return kernel


def attention_forward(x, w1, b1, w2, b2=None, *, block_b=None):
    """x: (B, S, D) float32; w1: (D, D) (pre-transposed for x @ W1);
    b1: (D,); w2: (D, 1); b2 accepted for interface parity but unused
    (softmax shift-invariance makes it a mathematical no-op). Returns (B, D)."""
    del b2
    B, S, D = x.shape
    out_dtype = x.dtype

    tb, S_pad, D_pad, tn, vmem_limit = _choose_tiles(B, S, D)
    if block_b is not None:
        tb = max(8, _round_up(block_b, 8))
    Bp = _round_up(B, tb)
    nb, nn = Bp // tb, D_pad // tn

    # HBM-bound kernel: feed x / w1 as bf16, keep small f32 vectors as is.
    # Zero-pad B -> Bp, S -> S_pad (sublane 8), D -> D_pad (lane 128).
    xb = jnp.pad(x.astype(jnp.bfloat16),
                 ((0, Bp - B), (0, S_pad - S), (0, D_pad - D)))
    w1b = jnp.pad(w1.astype(jnp.bfloat16), ((0, D_pad - D), (0, D_pad - D)))
    b1p = jnp.pad(b1.astype(jnp.float32), (0, D_pad - D)).reshape(1, D_pad)
    w2p = jnp.pad(w2.reshape(-1).astype(jnp.float32),
                  (0, D_pad - D)).reshape(1, D_pad)

    kernel = _make_kernel(S, S_pad)

    def build(single_buffer_weights):
        # Single-buffer the fully-resident weights (constant index map) to
        # halve their VMEM footprint; double-buffer them when the hidden dim
        # is tiled (index changes per step, keep the DMA pipelined).
        mode = pl.Buffered(1) if (single_buffer_weights and nn == 1) else None

        def wspec(shape, imap):
            if mode is None:
                return pl.BlockSpec(shape, imap)
            return pl.BlockSpec(shape, imap, pipeline_mode=mode)

        return pl.pallas_call(
            kernel,
            out_shape=jax.ShapeDtypeStruct((Bp, D_pad), out_dtype),
            grid_spec=pltpu.PrefetchScalarGridSpec(
                num_scalar_prefetch=0,
                grid=(nb, nn),
                in_specs=[
                    pl.BlockSpec((tb, S_pad, D_pad), lambda i, n: (i, 0, 0)),
                    wspec((D_pad, tn), lambda i, n: (0, n)),   # w1 column tile
                    wspec((1, tn), lambda i, n: (0, n)),       # b1 tile
                    wspec((1, tn), lambda i, n: (0, n)),       # w2 row tile
                ],
                out_specs=pl.BlockSpec((tb, D_pad), lambda i, n: (i, 0)),
                scratch_shapes=[pltpu.VMEM((tb, S_pad), jnp.float32)],
            ),
            compiler_params=pltpu.CompilerParams(
                dimension_semantics=("parallel", "arbitrary"),
                vmem_limit_bytes=vmem_limit,
            ),
        )

    try:
        out = build(True)(xb, w1b, b1p, w2p)
    except Exception:
        # pl.Buffered(1) unsupported on this jax version -> default buffering.
        out = build(False)(xb, w1b, b1p, w2p)
    return out[:B, :D]


def init_params(key, input_dim):
    """Deterministic init mimicking nn.Linear default (uniform +/- 1/sqrt(fan_in))."""
    k1, k2, k3, k4 = jax.random.split(key, 4)
    bound = 1.0 / jnp.sqrt(input_dim)
    # Stored already transposed so the kernel computes x @ W1 (PyTorch: x @ W.T).
    w1 = jax.random.uniform(k1, (input_dim, input_dim), jnp.float32, -bound, bound)
    b1 = jax.random.uniform(k2, (input_dim,), jnp.float32, -bound, bound)
    w2 = jax.random.uniform(k3, (input_dim, 1), jnp.float32, -bound, bound)
    b2 = jax.random.uniform(k4, (1,), jnp.float32, -bound, bound)
    return w1, b1, w2, b2


def reference_forward(x, w1, b1, w2, b2):
    """Plain-JAX reference of the PyTorch forward (eval mode)."""
    h = jnp.tanh(x @ w1 + b1)                       # (B, S, D)
    s = h @ w2 + b2                                 # (B, S, 1)
    p = jax.nn.softmax(s, axis=1)                   # softmax over sequence
    return jnp.sum(x * p, axis=1)                   # (B, D)


if __name__ == "__main__":
    B, S, D = 4, 8, 32
    key = jax.random.PRNGKey(0)
    kx, kp = jax.random.split(key)
    x = jax.random.normal(kx, (B, S, D), jnp.float32)
    w1, b1, w2, b2 = init_params(kp, D)

    out = jax.block_until_ready(attention_forward(x, w1, b1, w2, b2))

    # Reference computed with the same bf16-rounded x/w1 the kernel consumes.
    xr = x.astype(jnp.bfloat16).astype(jnp.float32)
    w1r = w1.astype(jnp.bfloat16).astype(jnp.float32)
    ref = reference_forward(xr, w1r, b1, w2, b2)

    assert out.shape == (B, D)
    assert jnp.allclose(out, ref, atol=5e-3, rtol=5e-3), (
        f"mismatch: max abs err {jnp.max(jnp.abs(out - ref))}"
    )
    print("KERNEL_OK")
</pallas_src>

<mosaic_0001>
module attributes {stable_mosaic.version = 11 : i64} {
  func.func @kernel(%arg0: i32, %arg1: i32, %arg2: memref<8x8x128xbf16, #tpu.memory_space<vmem>>, %arg3: memref<128x128xbf16, #tpu.memory_space<vmem>>, %arg4: memref<1x128xf32, #tpu.memory_space<vmem>>, %arg5: memref<1x128xf32, #tpu.memory_space<vmem>>, %arg6: memref<8x128xf32, #tpu.memory_space<vmem>>, %arg7: memref<8x8xf32, #tpu.memory_space<vmem>>) attributes {dimension_semantics = [#tpu.dimension_semantics<parallel>, #tpu.dimension_semantics<arbitrary>], iteration_bounds = array<i64: 1, 1>, scalar_prefetch = 0 : i64, scratch_operands = 1 : i64, tpu.core_type = #tpu.core_type<tc>, window_params = [{transform_indices = @transform_0, window_bounds = array<i64: 8, 8, 128>}, {pipeline_mode = #tpu.pipeline_mode<synchronous>, transform_indices = @transform_1, window_bounds = array<i64: 128, 128>}, {pipeline_mode = #tpu.pipeline_mode<synchronous>, transform_indices = @transform_2, window_bounds = array<i64: 1, 128>}, {pipeline_mode = #tpu.pipeline_mode<synchronous>, transform_indices = @transform_3, window_bounds = array<i64: 1, 128>}, {transform_indices = @transform_4, window_bounds = array<i64: 8, 128>}]} {
    %c0_i32 = arith.constant 0 : i32
    %0 = arith.cmpi eq, %arg1, %c0_i32 : i32
    %1 = arith.extui %0 : i1 to i32
    %c0_i32_0 = arith.constant 0 : i32
    %2 = arith.cmpi ne, %1, %c0_i32_0 : i32
    scf.if %2 {
      %cst_16 = arith.constant 0.000000e+00 : f32
      %23 = vector.broadcast %cst_16 : f32 to vector<8x8xf32>
      %c0_17 = arith.constant 0 : index
      %c0_18 = arith.constant 0 : index
      %24 = vector.load %arg7[%c0_17, %c0_18] : memref<8x8xf32, #tpu.memory_space<vmem>>, vector<8x8xf32>
      tpu.vector_store %arg7[%c0_17, %c0_18], %23 {strides = array<i32>} : memref<8x8xf32, #tpu.memory_space<vmem>>, vector<8x8xf32>,
    } else {
    }
    %c0 = arith.constant 0 : index
    %c0_1 = arith.constant 0 : index
    %c0_2 = arith.constant 0 : index
    %3 = vector.load %arg2[%c0, %c0_1, %c0_2] : memref<8x8x128xbf16, #tpu.memory_space<vmem>>, vector<8x8x128xbf16>
    %4 = vector.shape_cast %3 : vector<8x8x128xbf16> to vector<64x128xbf16>
    %c0_3 = arith.constant 0 : index
    %c0_4 = arith.constant 0 : index
    %5 = vector.load %arg3[%c0_3, %c0_4] : memref<128x128xbf16, #tpu.memory_space<vmem>>, vector<128x128xbf16>
    %cst = arith.constant dense<0.000000e+00> : vector<64x128xf32>
    %6 = tpu.matmul %4, %5, %cst {dimension_numbers = #tpu.dot_dimension_numbers<[1], [0], [0], [1], [0, 0, 1, 1], [], []>} : vector<64x128xbf16>, vector<128x128xbf16>, vector<64x128xf32> -> vector<64x128xf32>
    %c0_5 = arith.constant 0 : index
    %c0_6 = arith.constant 0 : index
    %7 = vector.load %arg4[%c0_5, %c0_6] : memref<1x128xf32, #tpu.memory_space<vmem>>, vector<1x128xf32>
    %8 = vector.broadcast %7 : vector<1x128xf32> to vector<64x128xf32>
    %9 = arith.addf %6, %8 : vector<64x128xf32>
    %10 = math.tanh %9 : vector<64x128xf32>
    %c0_7 = arith.constant 0 : index
    %c0_8 = arith.constant 0 : index
    %11 = vector.load %arg7[%c0_7, %c0_8] : memref<8x8xf32, #tpu.memory_space<vmem>>, vector<8x8xf32>
    %12 = vector.shape_cast %10 : vector<64x128xf32> to vector<8x8x128xf32>
    %c0_9 = arith.constant 0 : index
    %c0_10 = arith.constant 0 : index
    %13 = vector.load %arg5[%c0_9, %c0_10] : memref<1x128xf32, #tpu.memory_space<vmem>>, vector<1x128xf32>
    %14 = vector.shape_cast %13 : vector<1x128xf32> to vector<1x1x128xf32>
    %15 = vector.broadcast %14 : vector<1x1x128xf32> to vector<8x8x128xf32>
    %16 = arith.mulf %12, %15 : vector<8x8x128xf32>
    %cst_11 = arith.constant dense<0.000000e+00> : vector<8x8xf32>
    %17 = vector.multi_reduction <add>, %16, %cst_11 [2] : vector<8x8x128xf32> to vector<8x8xf32>
    %18 = arith.addf %11, %17 : vector<8x8xf32>
    %c0_12 = arith.constant 0 : index
    %c0_13 = arith.constant 0 : index
    %19 = vector.load %arg7[%c0_12, %c0_13] : memref<8x8xf32, #tpu.memory_space<vmem>>, vector<8x8xf32>
    tpu.vector_store %arg7[%c0_12, %c0_13], %18 {strides = array<i32>} : memref<8x8xf32, #tpu.memory_space<vmem>>, vector<8x8xf32>,
    %c0_i32_14 = arith.constant 0 : i32
    %20 = arith.cmpi eq, %arg1, %c0_i32_14 : i32
    %21 = arith.extui %20 : i1 to i32
    %c0_i32_15 = arith.constant 0 : i32
    %22 = arith.cmpi ne, %21, %c0_i32_15 : i32
    scf.if %22 {
      %c0_16 = arith.constant 0 : index
      %c0_17 = arith.constant 0 : index
      %23 = vector.load %arg7[%c0_16, %c0_17] : memref<8x8xf32, #tpu.memory_space<vmem>>, vector<8x8xf32>
      %cst_18 = arith.constant dense<0xFF800000> : vector<8xf32>
      %24 = vector.multi_reduction <maximumf>, %23, %cst_18 [1] : vector<8x8xf32> to vector<8xf32>
      %25 = vector.shape_cast %24 : vector<8xf32> to vector<8x1xf32>
      %26 = vector.broadcast %25 : vector<8x1xf32> to vector<8x8xf32>
      %27 = arith.subf %23, %26 : vector<8x8xf32>
      %28 = math.exp %27 : vector<8x8xf32>
      %cst_19 = arith.constant dense<0.000000e+00> : vector<8xf32>
      %29 = vector.multi_reduction <add>, %28, %cst_19 [1] : vector<8x8xf32> to vector<8xf32>
      %30 = vector.shape_cast %29 : vector<8xf32> to vector<8x1xf32>
      %31 = tpu.reciprocal %30 {approx = true} : vector<8x1xf32> -> vector<8x1xf32>
      %32 = vector.broadcast %31 : vector<8x1xf32> to vector<8x8xf32>
      %33 = arith.mulf %28, %32 : vector<8x8xf32>
      %c0_20 = arith.constant 0 : index
      %c0_21 = arith.constant 0 : index
      %c0_22 = arith.constant 0 : index
      %34 = vector.load %arg2[%c0_20, %c0_21, %c0_22] : memref<8x8x128xbf16, #tpu.memory_space<vmem>>, vector<8x8x128xbf16>
      %35 = arith.extf %34 : vector<8x8x128xbf16> to vector<8x8x128xf32>
      %36 = vector.shape_cast %33 : vector<8x8xf32> to vector<8x8x1xf32>
      %37 = vector.broadcast %36 : vector<8x8x1xf32> to vector<8x8x128xf32>
      %38 = arith.mulf %35, %37 : vector<8x8x128xf32>
      %cst_23 = arith.constant dense<0.000000e+00> : vector<8x128xf32>
      %39 = vector.multi_reduction <add>, %38, %cst_23 [1] : vector<8x8x128xf32> to vector<8x128xf32>
      %c0_24 = arith.constant 0 : index
      %c0_25 = arith.constant 0 : index
      %40 = vector.load %arg6[%c0_24, %c0_25] : memref<8x128xf32, #tpu.memory_space<vmem>>, vector<8x128xf32>
      tpu.vector_store %arg6[%c0_24, %c0_25], %39 {strides = array<i32>} : memref<8x128xf32, #tpu.memory_space<vmem>>, vector<8x128xf32>,
    } else {
    }
    return
  }
  func.func @transform_0(%arg0: i32, %arg1: i32) -> (i32, i32, i32) {
    %c0_i32 = arith.constant 0 : i32
    %c0_i32_0 = arith.constant 0 : i32
    %c0_i32_1 = arith.constant 0 : i32
    return %arg0, %c0_i32, %c0_i32_0 : i32, i32, i32
  }
  func.func @transform_1(%arg0: i32, %arg1: i32) -> (i32, i32) {
    %c0_i32 = arith.constant 0 : i32
    %c0_i32_0 = arith.constant 0 : i32
    return %c0_i32, %arg1 : i32, i32
  }
  func.func @transform_2(%arg0: i32, %arg1: i32) -> (i32, i32) {
    %c0_i32 = arith.constant 0 : i32
    %c0_i32_0 = arith.constant 0 : i32
    return %c0_i32, %arg1 : i32, i32
  }
  func.func @transform_3(%arg0: i32, %arg1: i32) -> (i32, i32) {
    %c0_i32 = arith.constant 0 : i32
    %c0_i32_0 = arith.constant 0 : i32
    return %c0_i32, %arg1 : i32, i32
  }
  func.func @transform_4(%arg0: i32, %arg1: i32) -> (i32, i32) {
    %c0_i32 = arith.constant 0 : i32
    %c0_i32_0 = arith.constant 0 : i32
    return %arg0, %c0_i32 : i32, i32
  }
}

module attributes {stable_mosaic.version = 11 : i64} {
  func.func @kernel(%arg0: i32, %arg1: i32, %arg2: memref<8x8x128xbf16, #tpu.memory_space<vmem>>, %arg3: memref<128x128xbf16, #tpu.memory_space<vmem>>, %arg4: memref<1x128xf32, #tpu.memory_space<vmem>>, %arg5: memref<1x128xf32, #tpu.memory_space<vmem>>, %arg6: memref<8x128xf32, #tpu.memory_space<vmem>>, %arg7: memref<8x8xf32, #tpu.memory_space<vmem>>) attributes {dimension_semantics = [#tpu.dimension_semantics<parallel>, #tpu.dimension_semantics<arbitrary>], iteration_bounds = array<i64: 1, 1>, scalar_prefetch = 0 : i64, scratch_operands = 1 : i64, tpu.core_type = #tpu.core_type<tc>, window_params = [{transform_indices = @transform_0, window_bounds = array<i64: 8, 8, 128>}, {transform_indices = @transform_1, window_bounds = array<i64: 128, 128>}, {transform_indices = @transform_2, window_bounds = array<i64: 1, 128>}, {transform_indices = @transform_3, window_bounds = array<i64: 1, 128>}, {transform_indices = @transform_4, window_bounds = array<i64: 8, 128>}]} {
    %c0_i32 = arith.constant 0 : i32
    %0 = arith.cmpi eq, %arg1, %c0_i32 : i32
    %1 = arith.extui %0 : i1 to i32
    %c0_i32_0 = arith.constant 0 : i32
    %2 = arith.cmpi ne, %1, %c0_i32_0 : i32
    scf.if %2 {
      %cst_16 = arith.constant 0.000000e+00 : f32
      %23 = vector.broadcast %cst_16 : f32 to vector<8x8xf32>
      %c0_17 = arith.constant 0 : index
      %c0_18 = arith.constant 0 : index
      %24 = vector.load %arg7[%c0_17, %c0_18] : memref<8x8xf32, #tpu.memory_space<vmem>>, vector<8x8xf32>
      tpu.vector_store %arg7[%c0_17, %c0_18], %23 {strides = array<i32>} : memref<8x8xf32, #tpu.memory_space<vmem>>, vector<8x8xf32>,
    } else {
    }
    %c0 = arith.constant 0 : index
    %c0_1 = arith.constant 0 : index
    %c0_2 = arith.constant 0 : index
    %3 = vector.load %arg2[%c0, %c0_1, %c0_2] : memref<8x8x128xbf16, #tpu.memory_space<vmem>>, vector<8x8x128xbf16>
    %4 = vector.shape_cast %3 : vector<8x8x128xbf16> to vector<64x128xbf16>
    %c0_3 = arith.constant 0 : index
    %c0_4 = arith.constant 0 : index
    %5 = vector.load %arg3[%c0_3, %c0_4] : memref<128x128xbf16, #tpu.memory_space<vmem>>, vector<128x128xbf16>
    %cst = arith.constant dense<0.000000e+00> : vector<64x128xf32>
    %6 = tpu.matmul %4, %5, %cst {dimension_numbers = #tpu.dot_dimension_numbers<[1], [0], [0], [1], [0, 0, 1, 1], [], []>} : vector<64x128xbf16>, vector<128x128xbf16>, vector<64x128xf32> -> vector<64x128xf32>
    %c0_5 = arith.constant 0 : index
    %c0_6 = arith.constant 0 : index
    %7 = vector.load %arg4[%c0_5, %c0_6] : memref<1x128xf32, #tpu.memory_space<vmem>>, vector<1x128xf32>
    %8 = vector.broadcast %7 : vector<1x128xf32> to vector<64x128xf32>
    %9 = arith.addf %6, %8 : vector<64x128xf32>
    %10 = math.tanh %9 : vector<64x128xf32>
    %c0_7 = arith.constant 0 : index
    %c0_8 = arith.constant 0 : index
    %11 = vector.load %arg7[%c0_7, %c0_8] : memref<8x8xf32, #tpu.memory_space<vmem>>, vector<8x8xf32>
    %12 = vector.shape_cast %10 : vector<64x128xf32> to vector<8x8x128xf32>
    %c0_9 = arith.constant 0 : index
    %c0_10 = arith.constant 0 : index
    %13 = vector.load %arg5[%c0_9, %c0_10] : memref<1x128xf32, #tpu.memory_space<vmem>>, vector<1x128xf32>
    %14 = vector.shape_cast %13 : vector<1x128xf32> to vector<1x1x128xf32>
    %15 = vector.broadcast %14 : vector<1x1x128xf32> to vector<8x8x128xf32>
    %16 = arith.mulf %12, %15 : vector<8x8x128xf32>
    %cst_11 = arith.constant dense<0.000000e+00> : vector<8x8xf32>
    %17 = vector.multi_reduction <add>, %16, %cst_11 [2] : vector<8x8x128xf32> to vector<8x8xf32>
    %18 = arith.addf %11, %17 : vector<8x8xf32>
    %c0_12 = arith.constant 0 : index
    %c0_13 = arith.constant 0 : index
    %19 = vector.load %arg7[%c0_12, %c0_13] : memref<8x8xf32, #tpu.memory_space<vmem>>, vector<8x8xf32>
    tpu.vector_store %arg7[%c0_12, %c0_13], %18 {strides = array<i32>} : memref<8x8xf32, #tpu.memory_space<vmem>>, vector<8x8xf32>,
    %c0_i32_14 = arith.constant 0 : i32
    %20 = arith.cmpi eq, %arg1, %c0_i32_14 : i32
    %21 = arith.extui %20 : i1 to i32
    %c0_i32_15 = arith.constant 0 : i32
    %22 = arith.cmpi ne, %21, %c0_i32_15 : i32
    scf.if %22 {
      %c0_16 = arith.constant 0 : index
      %c0_17 = arith.constant 0 : index
      %23 = vector.load %arg7[%c0_16, %c0_17] : memref<8x8xf32, #tpu.memory_space<vmem>>, vector<8x8xf32>
      %cst_18 = arith.constant dense<0xFF800000> : vector<8xf32>
      %24 = vector.multi_reduction <maximumf>, %23, %cst_18 [1] : vector<8x8xf32> to vector<8xf32>
      %25 = vector.shape_cast %24 : vector<8xf32> to vector<8x1xf32>
      %26 = vector.broadcast %25 : vector<8x1xf32> to vector<8x8xf32>
      %27 = arith.subf %23, %26 : vector<8x8xf32>
      %28 = math.exp %27 : vector<8x8xf32>
      %cst_19 = arith.constant dense<0.000000e+00> : vector<8xf32>
      %29 = vector.multi_reduction <add>, %28, %cst_19 [1] : vector<8x8xf32> to vector<8xf32>
      %30 = vector.shape_cast %29 : vector<8xf32> to vector<8x1xf32>
      %31 = tpu.reciprocal %30 {approx = true} : vector<8x1xf32> -> vector<8x1xf32>
      %32 = vector.broadcast %31 : vector<8x1xf32> to vector<8x8xf32>
      %33 = arith.mulf %28, %32 : vector<8x8xf32>
      %c0_20 = arith.constant 0 : index
      %c0_21 = arith.constant 0 : index
      %c0_22 = arith.constant 0 : index
      %34 = vector.load %arg2[%c0_20, %c0_21, %c0_22] : memref<8x8x128xbf16, #tpu.memory_space<vmem>>, vector<8x8x128xbf16>
      %35 = arith.extf %34 : vector<8x8x128xbf16> to vector<8x8x128xf32>
      %36 = vector.shape_cast %33 : vector<8x8xf32> to vector<8x8x1xf32>
      %37 = vector.broadcast %36 : vector<8x8x1xf32> to vector<8x8x128xf32>
      %38 = arith.mulf %35, %37 : vector<8x8x128xf32>
      %cst_23 = arith.constant dense<0.000000e+00> : vector<8x128xf32>
      %39 = vector.multi_reduction <add>, %38, %cst_23 [1] : vector<8x8x128xf32> to vector<8x128xf32>
      %c0_24 = arith.constant 0 : index
      %c0_25 = arith.constant 0 : index
      %40 = vector.load %arg6[%c0_24, %c0_25] : memref<8x128xf32, #tpu.memory_space<vmem>>, vector<8x128xf32>
      tpu.vector_store %arg6[%c0_24, %c0_25], %39 {strides = array<i32>} : memref<8x128xf32, #tpu.memory_space<vmem>>, vector<8x128xf32>,
    } else {
    }
    return
  }
  func.func @transform_0(%arg0: i32, %arg1: i32) -> (i32, i32, i32) {
    %c0_i32 = arith.constant 0 : i32
    %c0_i32_0 = arith.constant 0 : i32
    %c0_i32_1 = arith.constant 0 : i32
    return %arg0, %c0_i32, %c0_i32_0 : i32, i32, i32
  }
  func.func @transform_1(%arg0: i32, %arg1: i32) -> (i32, i32) {
    %c0_i32 = arith.constant 0 : i32
    %c0_i32_0 = arith.constant 0 : i32
    return %c0_i32, %arg1 : i32, i32
  }
  func.func @transform_2(%arg0: i32, %arg1: i32) -> (i32, i32) {
    %c0_i32 = arith.constant 0 : i32
    %c0_i32_0 = arith.constant 0 : i32
    return %c0_i32, %arg1 : i32, i32
  }
  func.func @transform_3(%arg0: i32, %arg1: i32) -> (i32, i32) {
    %c0_i32 = arith.constant 0 : i32
    %c0_i32_0 = arith.constant 0 : i32
    return %c0_i32, %arg1 : i32, i32
  }
  func.func @transform_4(%arg0: i32, %arg1: i32) -> (i32, i32) {
    %c0_i32 = arith.constant 0 : i32
    %c0_i32_0 = arith.constant 0 : i32
    return %arg0, %c0_i32 : i32, i32
  }
}

</mosaic_0001>

<bundles_post_ra>
// kernel: tpu_custom_call.1
= control target key start
LH: loop header
LB: loop body
LE: loop exit
PB: predicated region body
PF: predicated region fallthrough
CT: control target
= control target key end

     0   :  { %9 = vsyncpa [#allocation4], 0  ;;  %s712_s0 = inlined_call_operand.hbm [shape: bf16[8,8,128], index: 0, kind: input, shape index: {}]   ;;  %s713_s1 = inlined_call_operand.hbm [shape: bf16[128,128], index: 1, kind: input, shape index: {}]   ;;  %s714_s2 = inlined_call_operand.vmem [shape: f32[1,128], index: 2, kind: input, shape index: {}]   ;;  %s715_s3 = inlined_call_operand.vmem [shape: f32[1,128], index: 3, kind: input, shape index: {}]   ;;  %s716_s4 = inlined_call_operand.hbm [shape: f32[8,128], index: 4, kind: output, shape index: {}]  }
   0x1   :  { %10 = vsyncpa [#allocation7], 0 }
   0x2   :  { %11 = vsyncpa [#allocation5], 0  ;;  %s16_s17 = sshll.u32 %s712_s0, 4  ;;  %s648_s18 = smov [#allocation3]   ;;  %s17_s17 = int_to_ptr.hbm [resolvable:$true] %s16_s17 }
   0x3   :  { %s18_s19 = sshll.u32 %s648_s18, 4  ;;  %s29_s22 = sshll.u32 %s713_s1, 4  ;;  %s19_s19 = int_to_ptr.vmem [resolvable:$true] %s18_s19  ;;  %s30_s22 = int_to_ptr.hbm [resolvable:$true] %s29_s22 }
   0x4   :  { %s649_s23 = smov 64   ;;  %s650_s24 = smov 4  }
   0x5   :  { %24 = dma.hbm_to_vmem [thread:$0]  %s17_s17, 512, %s19_s19, [#allocation4], %s649_s23, %s649_s23, %s650_s24  }
   0x6   :  { %s651_s25 = smov [#allocation6]  }
   0x7   :  { %s31_s26 = sshll.u32 %s651_s25, 4  ;;  %s32_s26 = int_to_ptr.vmem [resolvable:$true] %s31_s26 }
   0x8   :  { %37 = dma.hbm_to_vmem [thread:$0]  %s30_s22, 1024, %s32_s26, [#allocation7], %s649_s23, %s649_s23, %s650_s24  }
   0x9   :  { %642 = dma.done.wait [#allocation4], 512  }
   0xa   :  { %643 = vsyncadd [#allocation4], 4294966784 }
   0xb   :  { %644 = dma.done.wait [#allocation7], 1024  }
   0xc   :  { %645 = vsyncadd [#allocation7], 4294966272  ;;  %v495_v0 = vld [vmem:[#allocation6 + $0x38] sm:$0xff]  ;;  %v494_v1 = vld [vmem:[#allocation6 + $0x30] sm:$0xff]  ;;  %vm54_vm0 = vcmask 64512   ;;  %v652_v46 = vmov 0.0   ;;  %v230_v49 = vlaneseq }
   0xd   :  { %156 = vmatpush.bf16.msra.mxu0 %v495_v0  ;;  %515 = vmatpush.bf16.msra.mxu1 %v495_v0  ;;  %v493_v2 = vld [vmem:[#allocation6 + $0x28] sm:$0xff]  ;;  %v492_v3 = vld [vmem:[#allocation6 + $0x20] sm:$0xff]  ;;  %v491_v4 = vld [vmem:[#allocation6 + $0x18] sm:$0xff]  ;;  %55 = vst.msk [vmem:[#allocation2] sm:$0xff] %vm54_vm0, %v652_v46  ;;  %vm240_vm1 = vcmask 1041409   ;;  %vm242_vm2 = vcmask 1042434  }
   0xe   :  { %516 = vmatpush.bf16.msra.mxu2 %v495_v0  ;;  %517 = vmatpush.bf16.msra.mxu3 %v495_v0  ;;  %v490_v5 = vld [vmem:[#allocation6 + $0x10] sm:$0xff]  ;;  %v489_v6 = vld [vmem:[#allocation6 + $0x8] sm:$0xff]  ;;  %v488_v7 = vld [vmem:[#allocation6] sm:$0xff]  ;;  %v231_v50 = vand.u32 127, %v230_v49  ;;  %vm244_vm3 = vcmask 1043459   ;;  %vm246_vm4 = vcmask 1044484  }
   0xf   :  { %v484_v8 = vld [vmem:[#allocation3] sm:$0xff]  ;;  %v485_v9 = vld [vmem:[#allocation3 + $0x8] sm:$0xff]  ;;  %v486_v10 = vld [vmem:[#allocation3 + $0x10] sm:$0xff]  ;;  %vm248_vm5 = vcmask 1045509   ;;  %vm250_vm6 = vcmask 1046534   ;;  %vm252_vm7 = vcmask 1047559  }
  0x10   :  { %v487_v11 = vld [vmem:[#allocation3 + $0x18] sm:$0xff]  ;;  %s425_s5 = sshll.u32 %s716_s4, 4  ;;  %s426_s5 = int_to_ptr.hbm [resolvable:$true] %s425_s5 }
  0x11   :  { %157 = vmatpush.bf16.msra.mxu0 %v494_v1  ;;  %518 = vmatpush.bf16.msra.mxu1 %v494_v1  ;;  %v548_v12 = vld [vmem:[%s714_s2] ss:$0 sm:$0xff]  ;;  %s653_s2 = smov [#allocation8]  }
  0x12   :  { %519 = vmatpush.bf16.msra.mxu2 %v494_v1  ;;  %520 = vmatpush.bf16.msra.mxu3 %v494_v1  ;;  %v549_v17 = vld [vmem:[%s715_s3] ss:$0 sm:$0xff]  ;;  %s423_s3 = sshll.u32 %s653_s2, 4  ;;  %s424_s3 = int_to_ptr.vmem [resolvable:$true] %s423_s3 }
  0x15   :  { %158 = vmatpush.bf16.msra.mxu0 %v493_v2  ;;  %521 = vmatpush.bf16.msra.mxu1 %v493_v2 }
  0x16   :  { %522 = vmatpush.bf16.msra.mxu2 %v493_v2  ;;  %523 = vmatpush.bf16.msra.mxu3 %v493_v2 }
  0x19   :  { %159 = vmatpush.bf16.msra.mxu0 %v492_v3  ;;  %524 = vmatpush.bf16.msra.mxu1 %v492_v3 }
  0x1a   :  { %525 = vmatpush.bf16.msra.mxu2 %v492_v3  ;;  %526 = vmatpush.bf16.msra.mxu3 %v492_v3 }
  0x1d   :  { %160 = vmatpush.bf16.msra.mxu0 %v491_v4  ;;  %527 = vmatpush.bf16.msra.mxu1 %v491_v4 }
  0x1e   :  { %528 = vmatpush.bf16.msra.mxu2 %v491_v4  ;;  %529 = vmatpush.bf16.msra.mxu3 %v491_v4 }
  0x21   :  { %161 = vmatpush.bf16.msra.mxu0 %v490_v5  ;;  %530 = vmatpush.bf16.msra.mxu1 %v490_v5 }
  0x22   :  { %531 = vmatpush.bf16.msra.mxu2 %v490_v5  ;;  %532 = vmatpush.bf16.msra.mxu3 %v490_v5 }
  0x25   :  { %162 = vmatpush.bf16.msra.mxu0 %v489_v6  ;;  %533 = vmatpush.bf16.msra.mxu1 %v489_v6 }
  0x26   :  { %534 = vmatpush.bf16.msra.mxu2 %v489_v6  ;;  %535 = vmatpush.bf16.msra.mxu3 %v489_v6  ;;  %v193_v6 = vld [vmem:[#allocation2] sm:$0xff] }
  0x29   :  { %163 = vmatpush.bf16.msra.mxu0 %v488_v7  ;;  %536 = vmatpush.bf16.msra.mxu1 %v488_v7 }
  0x2a   :  { %537 = vmatpush.bf16.msra.mxu2 %v488_v7  ;;  %538 = vmatpush.bf16.msra.mxu3 %v488_v7 }
  0x2c   :  { %164 = vmatmul.bf16.vlgmr.msra.gmra.mxu0 %v484_v8  ;;  %169 = vmatmul.bf16.vlgmr.msra.gmra.mxu1 %v485_v9 }
  0x2d   :  { %174 = vmatmul.bf16.vlgmr.msra.gmra.mxu2 %v486_v10  ;;  %179 = vmatmul.bf16.vlgmr.msra.gmra.mxu3 %v487_v11 }
  0xa9   :  { %v165_v13 = vpop.f32.mrf.mxu0  ;;  %v170_v14 = vpop.f32.mrf.mxu1 }
  0xaa   :  { %v166_v15 = vadd.f32 %v548_v12, %v165_v13  ;;  %v171_v16 = vadd.f32 %v548_v12, %v170_v14 }
  0xac   :  { %550 = vtanh.f32 %v166_v15 }
  0xad   :  { %552 = vtanh.f32 %v171_v16 }
  0xb0   :  { %v175_v18 = vpop.f32.mrf.mxu2  ;;  %v180_v19 = vpop.f32.mrf.mxu3 }
  0xb1   :  { %v176_v20 = vadd.f32 %v548_v12, %v175_v18  ;;  %v167_v21 = vpop.f32.mrf.mxu0  ;;  %v172_v22 = vpop.f32.mrf.mxu1  ;;  %v181_v29 = vadd.f32 %v548_v12, %v180_v19 }
  0xb2   :  { %v551_v23 = vpop.eup %550  ;;  %v168_v24 = vadd.f32 %v548_v12, %v167_v21  ;;  %v173_v25 = vadd.f32 %v548_v12, %v172_v22 }
  0xb3   :  { %v553_v26 = vpop.eup %552  ;;  %554 = vtanh.f32 %v176_v20  ;;  %v198_v27 = vmul.f32 %v551_v23, %v549_v17 }
  0xb4   :  { %v200_v28 = vmul.f32 %v553_v26, %v549_v17  ;;  %556 = vtanh.f32 %v168_v24 }
  0xb5   :  { %206 = vadd.xlane.f32.xlu0 %v198_v27  ;;  %558 = vtanh.f32 %v173_v25 }
  0xb6   :  { %210 = vadd.xlane.f32.xlu1 %v200_v28  ;;  %560 = vtanh.f32 %v181_v29 }
  0xb8   :  { %v177_v30 = vpop.f32.mrf.mxu2  ;;  %v182_v31 = vpop.f32.mrf.mxu3 }
  0xb9   :  { %v555_v32 = vpop.eup %554  ;;  %v178_v33 = vadd.f32 %v548_v12, %v177_v30  ;;  %v183_v34 = vadd.f32 %v548_v12, %v182_v31  ;;  %v497_v31 = vld [vmem:[#allocation3] sm:$0xff]  }
  0xba   :  { %v202_v35 = vmul.f32 %v555_v32, %v549_v17  ;;  %v557_v36 = vpop.eup %556  ;;  %v499_v32 = vunpack.c.h.bf16 %v497_v31 }
  0xbb   :  { %562 = vtanh.f32 %v178_v33  ;;  %v559_v37 = vpop.eup %558  ;;  %v199_v38 = vmul.f32 %v557_v36, %v549_v17  ;;  %v512_v33 = vld [vmem:[#allocation3 + $0x8] sm:$0xff]  }
  0xbc   :  { %564 = vtanh.f32 %v183_v34  ;;  %214 = vadd.xlane.f32.xlu2 %v202_v35  ;;  %v201_v39 = vmul.f32 %v559_v37, %v549_v17  ;;  %v561_v40 = vpop.eup %560  ;;  %v503_v36 = vunpack.c.h.bf16 %v512_v33  ;;  %v502_v37 = vunpack.c.l.bf16 %v512_v33 }
  0xbd   :  { %208 = vadd.xlane.f32.xlu0 %v199_v38  ;;  %v204_v44 = vmul.f32 %v561_v40, %v549_v17  ;;  %v513_v38 = vld [vmem:[#allocation3 + $0x10] sm:$0xff]  }
  0xbe   :  { %212 = vadd.xlane.f32.xlu1 %v201_v39  ;;  %v498_v39 = vunpack.c.l.bf16 %v497_v31 }
  0xc1   :  { %v563_v41 = vpop.eup %562 }
  0xc2   :  { %v565_v42 = vpop.eup %564  ;;  %v203_v43 = vmul.f32 %v563_v41, %v549_v17 }
  0xc3   :  { %v205_v45 = vmul.f32 %v565_v42, %v549_v17  ;;  %v291_v17 = vshrl.u32 %v230_v49, 7  ;;  %v514_v42 = vld [vmem:[#allocation3 + $0x18] sm:$0xff]  }
  0xc4   :  { %216 = vadd.xlane.f32.xlu2 %v203_v43 }
  0xc5   :  { %218 = vadd.xlane.f32.xlu0 %v204_v44  ;;  %546 = vset.pattern.permute.xlu2 %v291_v17  ;;  %v507_v44 = vunpack.c.h.bf16 %v513_v38 }
  0xc6   :  { %220 = vadd.xlane.f32.xlu1 %v205_v45  ;;  %547 = vset.pattern.permute.xlu0 %v291_v17 }
  0xc7   :  { %545 = vset.pattern.permute.xlu1 %v291_v17 }
 0x128   :  { %v207_v47 = vpop.xlane.xlu0 %206 }
 0x129   :  { %v211_v48 = vpop.xlane.xlu1 %210  ;;  %v232_v53 = vperm.slane %v207_v47, %v231_v50 }
 0x12a   :  { %v234_v56 = vperm.slane %v211_v48, %v231_v50 }
 0x12f   :  { %v215_v51 = vpop.xlane.xlu2 %214 }
 0x130   :  { %v209_v52 = vpop.xlane.xlu0 %208  ;;  %v236_v61 = vperm.slane %v215_v51, %v231_v50 }
 0x131   :  { %v213_v54 = vpop.xlane.xlu1 %212  ;;  %v233_v55 = vperm.slane %v209_v52, %v231_v50 }
 0x132   :  { %v235_v57 = vperm.slane %v213_v54, %v231_v50 }
 0x133   :  { %v241_v58 = vsel %vm240_vm1, %v233_v55, %v232_v53 }
 0x134   :  { %v243_v59 = vsel %vm242_vm2, %v234_v56, %v241_v58 }
 0x135   :  { %v245_v60 = vsel %vm244_vm3, %v235_v57, %v243_v59  ;;  %v506_v57 = vunpack.c.l.bf16 %v513_v38 }
 0x136   :  { %v247_v0 = vsel %vm246_vm4, %v236_v61, %v245_v60 }
 0x137   :  { %v217_v62 = vpop.xlane.xlu2 %216 }
 0x138   :  { %v237_v63 = vperm.slane %v217_v62, %v231_v50  ;;  %v219_v1 = vpop.xlane.xlu0 %218 }
 0x139   :  { %v221_v3 = vpop.xlane.xlu1 %220  ;;  %v238_v4 = vperm.slane %v219_v1, %v231_v50 }
 0x13a   :  { %v249_v2 = vsel %vm248_vm5, %v237_v63, %v247_v0  ;;  %v239_v5 = vperm.slane %v221_v3, %v231_v50  ;;  %v511_v50 = vunpack.c.h.bf16 %v514_v42 }
 0x13b   :  { %v251_v7 = vsel %vm250_vm6, %v238_v4, %v249_v2 }
 0x13c   :  { %v253_v8 = vsel %vm252_vm7, %v239_v5, %v251_v7 }
 0x13d   :  { %v255_v9 = vadd.f32 %v253_v8, %v193_v6 }
 0x13f   :  { %257 = vst.msk [vmem:[#allocation2] sm:$0xff] %vm54_vm0, %v255_v9 }
 0x146   :  { %v261_v10 = vld [vmem:[#allocation2] sm:$0xff] }
 0x147   :  { %v262_v11 = vsel %vm54_vm0, %v261_v10, -inf }
 0x148   :  { %263 = vmax.xlane.f32.xlu2 %v262_v11  ;;  %v510_v11 = vunpack.c.l.bf16 %v514_v42 }
 0x1bb   :  { %v264_v12 = vpop.xlane.xlu2 %263 }
 0x1bc   :  { %v265_v13 = vsub.f32 %v261_v10, %v264_v12 }
 0x1be   :  { %v266_v14 = vmul.f32 1.442695, %v265_v13 }
 0x1c0   :  { %566 = vpow2.f32 %v266_v14 }
 0x1c6   :  { %v567_v15 = vpop.eup %566 }
 0x1c7   :  { %v268_v16 = vsel %vm54_vm0, %v567_v15, 0.0 }
 0x1c8   :  { %269 = vadd.xlane.f32.xlu0 %v268_v16 }
 0x23b   :  { %v270_v18 = vpop.xlane.xlu0 %269 }
 0x23c   :  { %568 = vrcp.f32 %v270_v18 }
 0x242   :  { %v569_v19 = vpop.eup %568 }
 0x243   :  { %v272_v20 = vmul.f32 %v569_v19, %v567_v15 }
 0x245   :  { %v303_v21 = vperm.slane %v272_v20, 2  ;;  %v296_v22 = vperm.slane %v272_v20, 1  ;;  %v289_v23 = vperm.slane %v272_v20, 0  ;;  %v310_v24 = vperm.slane %v272_v20, 3 }
 0x246   :  { %v317_v25 = vperm.slane %v272_v20, 4  ;;  %v324_v26 = vperm.slane %v272_v20, 5  ;;  %v331_v27 = vperm.slane %v272_v20, 6  ;;  %v338_v28 = vperm.slane %v272_v20, 7 }
 0x247   :  { %308 = vperm.xlu0 %547, %v303_v21   ;;  %301 = vperm.xlu2 %546, %v296_v22  }
 0x248   :  { %294 = vperm.xlu1 %545, %v289_v23  }
 0x24f   :  { %315 = vperm.xlu2 %546, %v310_v24  }
 0x250   :  { %322 = vperm.xlu1 %545, %v317_v25  }
 0x257   :  { %329 = vperm.xlu2 %546, %v324_v26  }
 0x258   :  { %336 = vperm.xlu1 %545, %v331_v27  }
 0x25f   :  { %343 = vperm.xlu2 %546, %v338_v28  }
 0x2a1   :  { %v302_v29 = vpop.permute.xlu2 %301 }
 0x2a2   :  { %v346_v35 = vmul.f32 %v499_v32, %v302_v29 }
 0x2a4   :  { %v359_v40 = vrot.slane %v346_v35, 4 }
 0x2a6   :  { %v360_v48 = vadd.f32 %v359_v40, %v346_v35 }
 0x2a8   :  { %v361_v58 = vrot.slane %v360_v48, 2 }
 0x2a9   :  { %v316_v30 = vpop.permute.xlu2 %315 }
 0x2aa   :  { %v348_v43 = vmul.f32 %v503_v36, %v316_v30  ;;  %v362_v3 = vadd.f32 %v361_v58, %v360_v48 }
 0x2ac   :  { %v371_v53 = vrot.slane %v348_v43, 4  ;;  %v363_v12 = vrot.slane %v362_v3, 1 }
 0x2ae   :  { %v372_v62 = vadd.f32 %v371_v53, %v348_v43  ;;  %v364_v22 = vadd.f32 %v363_v12, %v362_v3 }
 0x2b0   :  { %v373_v7 = vrot.slane %v372_v62, 2 }
 0x2b1   :  { %v330_v34 = vpop.permute.xlu2 %329 }
 0x2b2   :  { %v350_v54 = vmul.f32 %v507_v44, %v330_v34  ;;  %v374_v16 = vadd.f32 %v373_v7, %v372_v62 }
 0x2b4   :  { %v383_v63 = vrot.slane %v350_v54, 4  ;;  %v375_v27 = vrot.slane %v374_v16, 1 }
 0x2b6   :  { %v384_v8 = vadd.f32 %v383_v63, %v350_v54  ;;  %v376_v35 = vadd.f32 %v375_v27, %v374_v16 }
 0x2b8   :  { %v385_v17 = vrot.slane %v384_v8, 2 }
 0x2b9   :  { %v309_v41 = vpop.permute.xlu0 %308  ;;  %v344_v51 = vpop.permute.xlu2 %343 }
 0x2ba   :  { %v347_v45 = vmul.f32 %v502_v37, %v309_v41  ;;  %v295_v46 = vpop.permute.xlu1 %294  ;;  %v352_v59 = vmul.f32 %v511_v50, %v344_v51  ;;  %v386_v28 = vadd.f32 %v385_v17, %v384_v8 }
 0x2bb   :  { %v345_v47 = vmul.f32 %v498_v39, %v295_v46 }
 0x2bc   :  { %v365_v49 = vrot.slane %v347_v45, 4  ;;  %v395_v4 = vrot.slane %v352_v59, 4  ;;  %v387_v36 = vrot.slane %v386_v28, 1 }
 0x2bd   :  { %v353_v52 = vrot.slane %v345_v47, 4 }
 0x2be   :  { %v366_v55 = vadd.f32 %v365_v49, %v347_v45  ;;  %v396_v13 = vadd.f32 %v395_v4, %v352_v59  ;;  %v388_v42 = vadd.f32 %v387_v36, %v386_v28 }
 0x2bf   :  { %v354_v56 = vadd.f32 %v353_v52, %v345_v47 }
 0x2c0   :  { %v367_v60 = vrot.slane %v366_v55, 2  ;;  %v397_v23 = vrot.slane %v396_v13, 2 }
 0x2c1   :  { %v355_v61 = vrot.slane %v354_v56, 2 }
 0x2c2   :  { %v323_v0 = vpop.permute.xlu1 %322  ;;  %v368_v5 = vadd.f32 %v367_v60, %v366_v55  ;;  %v398_v31 = vadd.f32 %v397_v23, %v396_v13 }
 0x2c3   :  { %v356_v1 = vadd.f32 %v355_v61, %v354_v56  ;;  %v349_v2 = vmul.f32 %v506_v57, %v323_v0 }
 0x2c4   :  { %v369_v14 = vrot.slane %v368_v5, 1  ;;  %v399_v38 = vrot.slane %v398_v31, 1 }
 0x2c5   :  { %v377_v6 = vrot.slane %v349_v2, 4  ;;  %v357_v9 = vrot.slane %v356_v1, 1 }
 0x2c6   :  { %v370_v24 = vadd.f32 %v369_v14, %v368_v5  ;;  %v400_v44 = vadd.f32 %v399_v38, %v398_v31 }
 0x2c7   :  { %v378_v10 = vadd.f32 %v377_v6, %v349_v2  ;;  %v358_v18 = vadd.f32 %v357_v9, %v356_v1 }
 0x2c9   :  { %v379_v15 = vrot.slane %v378_v10, 2  ;;  %v409_v29 = vsel %vm240_vm1, %v364_v22, %v358_v18 }
 0x2ca   :  { %v337_v19 = vpop.permute.xlu1 %336  ;;  %v410_v32 = vsel %vm242_vm2, %v370_v24, %v409_v29 }
 0x2cb   :  { %v380_v20 = vadd.f32 %v379_v15, %v378_v10  ;;  %v351_v21 = vmul.f32 %v510_v11, %v337_v19  ;;  %v411_v39 = vsel %vm244_vm3, %v376_v35, %v410_v32 }
 0x2cd   :  { %v381_v25 = vrot.slane %v380_v20, 1  ;;  %v389_v26 = vrot.slane %v351_v21, 4 }
 0x2cf   :  { %v390_v30 = vadd.f32 %v389_v26, %v351_v21  ;;  %v382_v33 = vadd.f32 %v381_v25, %v380_v20 }
 0x2d1   :  { %v391_v34 = vrot.slane %v390_v30, 2  ;;  %v412_v40 = vsel %vm246_vm4, %v382_v33, %v411_v39 }
 0x2d2   :  { %v413_v45 = vsel %vm248_vm5, %v388_v42, %v412_v40 }
 0x2d3   :  { %v392_v37 = vadd.f32 %v391_v34, %v390_v30 }
 0x2d5   :  { %v393_v41 = vrot.slane %v392_v37, 1 }
 0x2d7   :  { %v394_v43 = vadd.f32 %v393_v41, %v392_v37 }
 0x2d9   :  { %v414_v46 = vsel %vm250_vm6, %v394_v43, %v413_v45 }
 0x2da   :  { %v415_v47 = vsel %vm252_vm7, %v400_v44, %v414_v46 }
 0x2db   :  { %417 = vst [vmem:[#allocation8] sm:$0xff] %v415_v47 }
 0x2dc   :  { %428 = dma.vmem_to_hbm [thread:$0]  %s424_s3, 128, %s426_s5, [#allocation5]  }
 0x2dd   :  { %646 = dma.done.wait [#allocation5], 128  }
 0x2de   :  { %647 = vsyncadd [#allocation5], 4294967168 }
 0x2df   :  { %433 = vsyncpa [#allocation4], 1 }
 0x2e0   :  { %434 = vsyncpa [#allocation7], 1 }
 0x2e1   :  { %435 = vsyncpa [#allocation5], 1 }

// kernel: tpu_custom_call.1
= control target key start
LH: loop header
LB: loop body
LE: loop exit
PB: predicated region body
PF: predicated region fallthrough
CT: control target
= control target key end

     0   :  { %9 = vsyncpa [#allocation4], 0  ;;  %s712_s0 = inlined_call_operand.hbm [shape: bf16[8,8,128], index: 0, kind: input, shape index: {}]   ;;  %s713_s1 = inlined_call_operand.hbm [shape: bf16[128,128], index: 1, kind: input, shape index: {}]   ;;  %s714_s2 = inlined_call_operand.vmem [shape: f32[1,128], index: 2, kind: input, shape index: {}]   ;;  %s715_s3 = inlined_call_operand.vmem [shape: f32[1,128], index: 3, kind: input, shape index: {}]   ;;  %s716_s4 = inlined_call_operand.hbm [shape: f32[8,128], index: 4, kind: output, shape index: {}]  }
   0x1   :  { %10 = vsyncpa [#allocation7], 0 }
   0x2   :  { %11 = vsyncpa [#allocation5], 0  ;;  %s16_s17 = sshll.u32 %s712_s0, 4  ;;  %s648_s18 = smov [#allocation3]   ;;  %s17_s17 = int_to_ptr.hbm [resolvable:$true] %s16_s17 }
   0x3   :  { %s18_s19 = sshll.u32 %s648_s18, 4  ;;  %s29_s22 = sshll.u32 %s713_s1, 4  ;;  %s19_s19 = int_to_ptr.vmem [resolvable:$true] %s18_s19  ;;  %s30_s22 = int_to_ptr.hbm [resolvable:$true] %s29_s22 }
   0x4   :  { %s649_s23 = smov 64   ;;  %s650_s24 = smov 4  }
   0x5   :  { %24 = dma.hbm_to_vmem [thread:$0]  %s17_s17, 512, %s19_s19, [#allocation4], %s649_s23, %s649_s23, %s650_s24  }
   0x6   :  { %s651_s25 = smov [#allocation6]  }
   0x7   :  { %s31_s26 = sshll.u32 %s651_s25, 4  ;;  %s32_s26 = int_to_ptr.vmem [resolvable:$true] %s31_s26 }
   0x8   :  { %37 = dma.hbm_to_vmem [thread:$0]  %s30_s22, 1024, %s32_s26, [#allocation7], %s649_s23, %s649_s23, %s650_s24  }
   0x9   :  { %642 = dma.done.wait [#allocation4], 512  }
   0xa   :  { %643 = vsyncadd [#allocation4], 4294966784 }
   0xb   :  { %644 = dma.done.wait [#allocation7], 1024  }
   0xc   :  { %645 = vsyncadd [#allocation7], 4294966272  ;;  %v495_v0 = vld [vmem:[#allocation6 + $0x38] sm:$0xff]  ;;  %v494_v1 = vld [vmem:[#allocation6 + $0x30] sm:$0xff]  ;;  %vm54_vm0 = vcmask 64512   ;;  %v652_v46 = vmov 0.0   ;;  %v230_v49 = vlaneseq }
   0xd   :  { %156 = vmatpush.bf16.msra.mxu0 %v495_v0  ;;  %515 = vmatpush.bf16.msra.mxu1 %v495_v0  ;;  %v493_v2 = vld [vmem:[#allocation6 + $0x28] sm:$0xff]  ;;  %v492_v3 = vld [vmem:[#allocation6 + $0x20] sm:$0xff]  ;;  %v491_v4 = vld [vmem:[#allocation6 + $0x18] sm:$0xff]  ;;  %55 = vst.msk [vmem:[#allocation2] sm:$0xff] %vm54_vm0, %v652_v46  ;;  %vm240_vm1 = vcmask 1041409   ;;  %vm242_vm2 = vcmask 1042434  }
   0xe   :  { %516 = vmatpush.bf16.msra.mxu2 %v495_v0  ;;  %517 = vmatpush.bf16.msra.mxu3 %v495_v0  ;;  %v490_v5 = vld [vmem:[#allocation6 + $0x10] sm:$0xff]  ;;  %v489_v6 = vld [vmem:[#allocation6 + $0x8] sm:$0xff]  ;;  %v488_v7 = vld [vmem:[#allocation6] sm:$0xff]  ;;  %v231_v50 = vand.u32 127, %v230_v49  ;;  %vm244_vm3 = vcmask 1043459   ;;  %vm246_vm4 = vcmask 1044484  }
   0xf   :  { %v484_v8 = vld [vmem:[#allocation3] sm:$0xff]  ;;  %v485_v9 = vld [vmem:[#allocation3 + $0x8] sm:$0xff]  ;;  %v486_v10 = vld [vmem:[#allocation3 + $0x10] sm:$0xff]  ;;  %vm248_vm5 = vcmask 1045509   ;;  %vm250_vm6 = vcmask 1046534   ;;  %vm252_vm7 = vcmask 1047559  }
  0x10   :  { %v487_v11 = vld [vmem:[#allocation3 + $0x18] sm:$0xff]  ;;  %s425_s5 = sshll.u32 %s716_s4, 4  ;;  %s426_s5 = int_to_ptr.hbm [resolvable:$true] %s425_s5 }
  0x11   :  { %157 = vmatpush.bf16.msra.mxu0 %v494_v1  ;;  %518 = vmatpush.bf16.msra.mxu1 %v494_v1  ;;  %v548_v12 = vld [vmem:[%s714_s2] ss:$0 sm:$0xff]  ;;  %s653_s2 = smov [#allocation8]  }
  0x12   :  { %519 = vmatpush.bf16.msra.mxu2 %v494_v1  ;;  %520 = vmatpush.bf16.msra.mxu3 %v494_v1  ;;  %v549_v17 = vld [vmem:[%s715_s3] ss:$0 sm:$0xff]  ;;  %s423_s3 = sshll.u32 %s653_s2, 4  ;;  %s424_s3 = int_to_ptr.vmem [resolvable:$true] %s423_s3 }
  0x15   :  { %158 = vmatpush.bf16.msra.mxu0 %v493_v2  ;;  %521 = vmatpush.bf16.msra.mxu1 %v493_v2 }
  0x16   :  { %522 = vmatpush.bf16.msra.mxu2 %v493_v2  ;;  %523 = vmatpush.bf16.msra.mxu3 %v493_v2 }
  0x19   :  { %159 = vmatpush.bf16.msra.mxu0 %v492_v3  ;;  %524 = vmatpush.bf16.msra.mxu1 %v492_v3 }
  0x1a   :  { %525 = vmatpush.bf16.msra.mxu2 %v492_v3  ;;  %526 = vmatpush.bf16.msra.mxu3 %v492_v3 }
  0x1d   :  { %160 = vmatpush.bf16.msra.mxu0 %v491_v4  ;;  %527 = vmatpush.bf16.msra.mxu1 %v491_v4 }
  0x1e   :  { %528 = vmatpush.bf16.msra.mxu2 %v491_v4  ;;  %529 = vmatpush.bf16.msra.mxu3 %v491_v4 }
  0x21   :  { %161 = vmatpush.bf16.msra.mxu0 %v490_v5  ;;  %530 = vmatpush.bf16.msra.mxu1 %v490_v5 }
  0x22   :  { %531 = vmatpush.bf16.msra.mxu2 %v490_v5  ;;  %532 = vmatpush.bf16.msra.mxu3 %v490_v5 }
  0x25   :  { %162 = vmatpush.bf16.msra.mxu0 %v489_v6  ;;  %533 = vmatpush.bf16.msra.mxu1 %v489_v6 }
  0x26   :  { %534 = vmatpush.bf16.msra.mxu2 %v489_v6  ;;  %535 = vmatpush.bf16.msra.mxu3 %v489_v6  ;;  %v193_v6 = vld [vmem:[#allocation2] sm:$0xff] }
  0x29   :  { %163 = vmatpush.bf16.msra.mxu0 %v488_v7  ;;  %536 = vmatpush.bf16.msra.mxu1 %v488_v7 }
  0x2a   :  { %537 = vmatpush.bf16.msra.mxu2 %v488_v7  ;;  %538 = vmatpush.bf16.msra.mxu3 %v488_v7 }
  0x2c   :  { %164 = vmatmul.bf16.vlgmr.msra.gmra.mxu0 %v484_v8  ;;  %169 = vmatmul.bf16.vlgmr.msra.gmra.mxu1 %v485_v9 }
  0x2d   :  { %174 = vmatmul.bf16.vlgmr.msra.gmra.mxu2 %v486_v10  ;;  %179 = vmatmul.bf16.vlgmr.msra.gmra.mxu3 %v487_v11 }
  0xa9   :  { %v165_v13 = vpop.f32.mrf.mxu0  ;;  %v170_v14 = vpop.f32.mrf.mxu1 }
  0xaa   :  { %v166_v15 = vadd.f32 %v548_v12, %v165_v13  ;;  %v171_v16 = vadd.f32 %v548_v12, %v170_v14 }
  0xac   :  { %550 = vtanh.f32 %v166_v15 }
  0xad   :  { %552 = vtanh.f32 %v171_v16 }
  0xb0   :  { %v175_v18 = vpop.f32.mrf.mxu2  ;;  %v180_v19 = vpop.f32.mrf.mxu3 }
  0xb1   :  { %v176_v20 = vadd.f32 %v548_v12, %v175_v18  ;;  %v167_v21 = vpop.f32.mrf.mxu0  ;;  %v172_v22 = vpop.f32.mrf.mxu1  ;;  %v181_v29 = vadd.f32 %v548_v12, %v180_v19 }
  0xb2   :  { %v551_v23 = vpop.eup %550  ;;  %v168_v24 = vadd.f32 %v548_v12, %v167_v21  ;;  %v173_v25 = vadd.f32 %v548_v12, %v172_v22 }
  0xb3   :  { %v553_v26 = vpop.eup %552  ;;  %554 = vtanh.f32 %v176_v20  ;;  %v198_v27 = vmul.f32 %v551_v23, %v549_v17 }
  0xb4   :  { %v200_v28 = vmul.f32 %v553_v26, %v549_v17  ;;  %556 = vtanh.f32 %v168_v24 }
  0xb5   :  { %206 = vadd.xlane.f32.xlu0 %v198_v27  ;;  %558 = vtanh.f32 %v173_v25 }
  0xb6   :  { %210 = vadd.xlane.f32.xlu1 %v200_v28  ;;  %560 = vtanh.f32 %v181_v29 }
  0xb8   :  { %v177_v30 = vpop.f32.mrf.mxu2  ;;  %v182_v31 = vpop.f32.mrf.mxu3 }
  0xb9   :  { %v555_v32 = vpop.eup %554  ;;  %v178_v33 = vadd.f32 %v548_v12, %v177_v30  ;;  %v183_v34 = vadd.f32 %v548_v12, %v182_v31  ;;  %v497_v31 = vld [vmem:[#allocation3] sm:$0xff]  }
  0xba   :  { %v202_v35 = vmul.f32 %v555_v32, %v549_v17  ;;  %v557_v36 = vpop.eup %556  ;;  %v499_v32 = vunpack.c.h.bf16 %v497_v31 }
  0xbb   :  { %562 = vtanh.f32 %v178_v33  ;;  %v559_v37 = vpop.eup %558  ;;  %v199_v38 = vmul.f32 %v557_v36, %v549_v17  ;;  %v512_v33 = vld [vmem:[#allocation3 + $0x8] sm:$0xff]  }
  0xbc   :  { %564 = vtanh.f32 %v183_v34  ;;  %214 = vadd.xlane.f32.xlu2 %v202_v35  ;;  %v201_v39 = vmul.f32 %v559_v37, %v549_v17  ;;  %v561_v40 = vpop.eup %560  ;;  %v503_v36 = vunpack.c.h.bf16 %v512_v33  ;;  %v502_v37 = vunpack.c.l.bf16 %v512_v33 }
  0xbd   :  { %208 = vadd.xlane.f32.xlu0 %v199_v38  ;;  %v204_v44 = vmul.f32 %v561_v40, %v549_v17  ;;  %v513_v38 = vld [vmem:[#allocation3 + $0x10] sm:$0xff]  }
  0xbe   :  { %212 = vadd.xlane.f32.xlu1 %v201_v39  ;;  %v498_v39 = vunpack.c.l.bf16 %v497_v31 }
  0xc1   :  { %v563_v41 = vpop.eup %562 }
  0xc2   :  { %v565_v42 = vpop.eup %564  ;;  %v203_v43 = vmul.f32 %v563_v41, %v549_v17 }
  0xc3   :  { %v205_v45 = vmul.f32 %v565_v42, %v549_v17  ;;  %v291_v17 = vshrl.u32 %v230_v49, 7  ;;  %v514_v42 = vld [vmem:[#allocation3 + $0x18] sm:$0xff]  }
  0xc4   :  { %216 = vadd.xlane.f32.xlu2 %v203_v43 }
  0xc5   :  { %218 = vadd.xlane.f32.xlu0 %v204_v44  ;;  %546 = vset.pattern.permute.xlu2 %v291_v17  ;;  %v507_v44 = vunpack.c.h.bf16 %v513_v38 }
  0xc6   :  { %220 = vadd.xlane.f32.xlu1 %v205_v45  ;;  %547 = vset.pattern.permute.xlu0 %v291_v17 }
  0xc7   :  { %545 = vset.pattern.permute.xlu1 %v291_v17 }
 0x128   :  { %v207_v47 = vpop.xlane.xlu0 %206 }
 0x129   :  { %v211_v48 = vpop.xlane.xlu1 %210  ;;  %v232_v53 = vperm.slane %v207_v47, %v231_v50 }
 0x12a   :  { %v234_v56 = vperm.slane %v211_v48, %v231_v50 }
 0x12f   :  { %v215_v51 = vpop.xlane.xlu2 %214 }
 0x130   :  { %v209_v52 = vpop.xlane.xlu0 %208  ;;  %v236_v61 = vperm.slane %v215_v51, %v231_v50 }
 0x131   :  { %v213_v54 = vpop.xlane.xlu1 %212  ;;  %v233_v55 = vperm.slane %v209_v52, %v231_v50 }
 0x132   :  { %v235_v57 = vperm.slane %v213_v54, %v231_v50 }
 0x133   :  { %v241_v58 = vsel %vm240_vm1, %v233_v55, %v232_v53 }
 0x134   :  { %v243_v59 = vsel %vm242_vm2, %v234_v56, %v241_v58 }
 0x135   :  { %v245_v60 = vsel %vm244_vm3, %v235_v57, %v243_v59  ;;  %v506_v57 = vunpack.c.l.bf16 %v513_v38 }
 0x136   :  { %v247_v0 = vsel %vm246_vm4, %v236_v61, %v245_v60 }
 0x137   :  { %v217_v62 = vpop.xlane.xlu2 %216 }
 0x138   :  { %v237_v63 = vperm.slane %v217_v62, %v231_v50  ;;  %v219_v1 = vpop.xlane.xlu0 %218 }
 0x139   :  { %v221_v3 = vpop.xlane.xlu1 %220  ;;  %v238_v4 = vperm.slane %v219_v1, %v231_v50 }
 0x13a   :  { %v249_v2 = vsel %vm248_vm5, %v237_v63, %v247_v0  ;;  %v239_v5 = vperm.slane %v221_v3, %v231_v50  ;;  %v511_v50 = vunpack.c.h.bf16 %v514_v42 }
 0x13b   :  { %v251_v7 = vsel %vm250_vm6, %v238_v4, %v249_v2 }
 0x13c   :  { %v253_v8 = vsel %vm252_vm7, %v239_v5, %v251_v7 }
 0x13d   :  { %v255_v9 = vadd.f32 %v253_v8, %v193_v6 }
 0x13f   :  { %257 = vst.msk [vmem:[#allocation2] sm:$0xff] %vm54_vm0, %v255_v9 }
 0x146   :  { %v261_v10 = vld [vmem:[#allocation2] sm:$0xff] }
 0x147   :  { %v262_v11 = vsel %vm54_vm0, %v261_v10, -inf }
 0x148   :  { %263 = vmax.xlane.f32.xlu2 %v262_v11  ;;  %v510_v11 = vunpack.c.l.bf16 %v514_v42 }
 0x1bb   :  { %v264_v12 = vpop.xlane.xlu2 %263 }
 0x1bc   :  { %v265_v13 = vsub.f32 %v261_v10, %v264_v12 }
 0x1be   :  { %v266_v14 = vmul.f32 1.442695, %v265_v13 }
 0x1c0   :  { %566 = vpow2.f32 %v266_v14 }
 0x1c6   :  { %v567_v15 = vpop.eup %566 }
 0x1c7   :  { %v268_v16 = vsel %vm54_vm0, %v567_v15, 0.0 }
 0x1c8   :  { %269 = vadd.xlane.f32.xlu0 %v268_v16 }
 0x23b   :  { %v270_v18 = vpop.xlane.xlu0 %269 }
 0x23c   :  { %568 = vrcp.f32 %v270_v18 }
 0x242   :  { %v569_v19 = vpop.eup %568 }
 0x243   :  { %v272_v20 = vmul.f32 %v569_v19, %v567_v15 }
 0x245   :  { %v303_v21 = vperm.slane %v272_v20, 2  ;;  %v296_v22 = vperm.slane %v272_v20, 1  ;;  %v289_v23 = vperm.slane %v272_v20, 0  ;;  %v310_v24 = vperm.slane %v272_v20, 3 }
 0x246   :  { %v317_v25 = vperm.slane %v272_v20, 4  ;;  %v324_v26 = vperm.slane %v272_v20, 5  ;;  %v331_v27 = vperm.slane %v272_v20, 6  ;;  %v338_v28 = vperm.slane %v272_v20, 7 }
 0x247   :  { %308 = vperm.xlu0 %547, %v303_v21   ;;  %301 = vperm.xlu2 %546, %v296_v22  }
 0x248   :  { %294 = vperm.xlu1 %545, %v289_v23  }
 0x24f   :  { %315 = vperm.xlu2 %546, %v310_v24  }
 0x250   :  { %322 = vperm.xlu1 %545, %v317_v25  }
 0x257   :  { %329 = vperm.xlu2 %546, %v324_v26  }
 0x258   :  { %336 = vperm.xlu1 %545, %v331_v27  }
 0x25f   :  { %343 = vperm.xlu2 %546, %v338_v28  }
 0x2a1   :  { %v302_v29 = vpop.permute.xlu2 %301 }
 0x2a2   :  { %v346_v35 = vmul.f32 %v499_v32, %v302_v29 }
 0x2a4   :  { %v359_v40 = vrot.slane %v346_v35, 4 }
 0x2a6   :  { %v360_v48 = vadd.f32 %v359_v40, %v346_v35 }
 0x2a8   :  { %v361_v58 = vrot.slane %v360_v48, 2 }
 0x2a9   :  { %v316_v30 = vpop.permute.xlu2 %315 }
 0x2aa   :  { %v348_v43 = vmul.f32 %v503_v36, %v316_v30  ;;  %v362_v3 = vadd.f32 %v361_v58, %v360_v48 }
 0x2ac   :  { %v371_v53 = vrot.slane %v348_v43, 4  ;;  %v363_v12 = vrot.slane %v362_v3, 1 }
 0x2ae   :  { %v372_v62 = vadd.f32 %v371_v53, %v348_v43  ;;  %v364_v22 = vadd.f32 %v363_v12, %v362_v3 }
 0x2b0   :  { %v373_v7 = vrot.slane %v372_v62, 2 }
 0x2b1   :  { %v330_v34 = vpop.permute.xlu2 %329 }
 0x2b2   :  { %v350_v54 = vmul.f32 %v507_v44, %v330_v34  ;;  %v374_v16 = vadd.f32 %v373_v7, %v372_v62 }
 0x2b4   :  { %v383_v63 = vrot.slane %v350_v54, 4  ;;  %v375_v27 = vrot.slane %v374_v16, 1 }
 0x2b6   :  { %v384_v8 = vadd.f32 %v383_v63, %v350_v54  ;;  %v376_v35 = vadd.f32 %v375_v27, %v374_v16 }
 0x2b8   :  { %v385_v17 = vrot.slane %v384_v8, 2 }
 0x2b9   :  { %v309_v41 = vpop.permute.xlu0 %308  ;;  %v344_v51 = vpop.permute.xlu2 %343 }
 0x2ba   :  { %v347_v45 = vmul.f32 %v502_v37, %v309_v41  ;;  %v295_v46 = vpop.permute.xlu1 %294  ;;  %v352_v59 = vmul.f32 %v511_v50, %v344_v51  ;;  %v386_v28 = vadd.f32 %v385_v17, %v384_v8 }
 0x2bb   :  { %v345_v47 = vmul.f32 %v498_v39, %v295_v46 }
 0x2bc   :  { %v365_v49 = vrot.slane %v347_v45, 4  ;;  %v395_v4 = vrot.slane %v352_v59, 4  ;;  %v387_v36 = vrot.slane %v386_v28, 1 }
 0x2bd   :  { %v353_v52 = vrot.slane %v345_v47, 4 }
 0x2be   :  { %v366_v55 = vadd.f32 %v365_v49, %v347_v45  ;;  %v396_v13 = vadd.f32 %v395_v4, %v352_v59  ;;  %v388_v42 = vadd.f32 %v387_v36, %v386_v28 }
 0x2bf   :  { %v354_v56 = vadd.f32 %v353_v52, %v345_v47 }
 0x2c0   :  { %v367_v60 = vrot.slane %v366_v55, 2  ;;  %v397_v23 = vrot.slane %v396_v13, 2 }
 0x2c1   :  { %v355_v61 = vrot.slane %v354_v56, 2 }
 0x2c2   :  { %v323_v0 = vpop.permute.xlu1 %322  ;;  %v368_v5 = vadd.f32 %v367_v60, %v366_v55  ;;  %v398_v31 = vadd.f32 %v397_v23, %v396_v13 }
 0x2c3   :  { %v356_v1 = vadd.f32 %v355_v61, %v354_v56  ;;  %v349_v2 = vmul.f32 %v506_v57, %v323_v0 }
 0x2c4   :  { %v369_v14 = vrot.slane %v368_v5, 1  ;;  %v399_v38 = vrot.slane %v398_v31, 1 }
 0x2c5   :  { %v377_v6 = vrot.slane %v349_v2, 4  ;;  %v357_v9 = vrot.slane %v356_v1, 1 }
 0x2c6   :  { %v370_v24 = vadd.f32 %v369_v14, %v368_v5  ;;  %v400_v44 = vadd.f32 %v399_v38, %v398_v31 }
 0x2c7   :  { %v378_v10 = vadd.f32 %v377_v6, %v349_v2  ;;  %v358_v18 = vadd.f32 %v357_v9, %v356_v1 }
 0x2c9   :  { %v379_v15 = vrot.slane %v378_v10, 2  ;;  %v409_v29 = vsel %vm240_vm1, %v364_v22, %v358_v18 }
 0x2ca   :  { %v337_v19 = vpop.permute.xlu1 %336  ;;  %v410_v32 = vsel %vm242_vm2, %v370_v24, %v409_v29 }
 0x2cb   :  { %v380_v20 = vadd.f32 %v379_v15, %v378_v10  ;;  %v351_v21 = vmul.f32 %v510_v11, %v337_v19  ;;  %v411_v39 = vsel %vm244_vm3, %v376_v35, %v410_v32 }
 0x2cd   :  { %v381_v25 = vrot.slane %v380_v20, 1  ;;  %v389_v26 = vrot.slane %v351_v21, 4 }
 0x2cf   :  { %v390_v30 = vadd.f32 %v389_v26, %v351_v21  ;;  %v382_v33 = vadd.f32 %v381_v25, %v380_v20 }
 0x2d1   :  { %v391_v34 = vrot.slane %v390_v30, 2  ;;  %v412_v40 = vsel %vm246_vm4, %v382_v33, %v411_v39 }
 0x2d2   :  { %v413_v45 = vsel %vm248_vm5, %v388_v42, %v412_v40 }
 0x2d3   :  { %v392_v37 = vadd.f32 %v391_v34, %v390_v30 }
 0x2d5   :  { %v393_v41 = vrot.slane %v392_v37, 1 }
 0x2d7   :  { %v394_v43 = vadd.f32 %v393_v41, %v392_v37 }
 0x2d9   :  { %v414_v46 = vsel %vm250_vm6, %v394_v43, %v413_v45 }
 0x2da   :  { %v415_v47 = vsel %vm252_vm7, %v400_v44, %v414_v46 }
 0x2db   :  { %417 = vst [vmem:[#allocation8] sm:$0xff] %v415_v47 }
 0x2dc   :  { %428 = dma.vmem_to_hbm [thread:$0]  %s424_s3, 128, %s426_s5, [#allocation5]  }
 0x2dd   :  { %646 = dma.done.wait [#allocation5], 128  }
 0x2de   :  { %647 = vsyncadd [#allocation5], 4294967168 }
 0x2df   :  { %433 = vsyncpa [#allocation4], 1 }
 0x2e0   :  { %434 = vsyncpa [#allocation7], 1 }
 0x2e1   :  { %435 = vsyncpa [#allocation5], 1 }

</bundles_post_ra>
